<compile_context>
chip_gen: v5e
topology: v5e:2x2
jax: 0.10.0
libtpu: 0.0.40
codegen_flags: <defaults>
</compile_context>

<pallas_src>
import functools

import jax
import jax.numpy as jnp
from jax.experimental import pallas as pl
from jax.experimental.pallas import tpu as pltpu


def _round_up(a, m):
    return (a + m - 1) // m * m


def _mlp_kernel(xT_ref, p_ref, o_ref, *, n_in, n_out):
    # xT_ref: (n_in, TB)                      -- streamed, batch on lanes
    # p_ref : (H, n_in + 1 + n_out + 1)       -- resident packed [w1.T | b1 | w2 | b2]
    # o_ref : (n_out, TB)                     -- lane-dense output tile
    x = xT_ref[...]                                   # (n_in, TB)
    w1 = p_ref[:, 0:n_in]                             # (H, n_in)
    b1 = p_ref[:, n_in:n_in + 1]                      # (H, 1)
    c0 = n_in + 1                                     # first w2 column

    # Hidden layer on the VPU: statically unrolled broadcast FMAs (tiny n_in).
    acc = w1[:, 0:1] * x[0:1, :]                      # (H, TB)
    for k in range(1, n_in):
        acc = acc + w1[:, k:k + 1] * x[k:k + 1, :]
    h = jnp.tanh(acc + b1)                            # EUP tanh, (H, TB)

    # Output layer: per-output sublane (XLU) reduction, direct per-row store
    # (no sublane concatenate / relayout).
    for o in range(n_out):                            # static unroll (tiny n_out)
        w2o = p_ref[:, c0 + o:c0 + o + 1]             # (H, 1)
        b2o = p_ref[o:o + 1, c0 + n_out:c0 + n_out + 1]   # (1, 1)
        row = jnp.sum(w2o * h, axis=0, keepdims=True) + b2o
        o_ref[o:o + 1, :] = row.astype(o_ref.dtype)


def pack_params(w1, b1, w2, b2):
    """Pack the four tiny parameter arrays into one (H, n_in+n_out+2) f32 slab.

    w1: (n_inputs, hidden)  b1: (hidden,)  w2: (hidden, n_outputs)  b2: (n_outputs,)
    Column layout: [ w1.T | b1 | w2 | b2 (in rows 0..n_out-1) ].
    Done once per model -> one resident DMA per pallas_call instead of four.
    """
    n_in, H = w1.shape
    n_out = w2.shape[1]
    b2_col = jnp.zeros((H, 1), jnp.float32).at[:n_out, 0].set(b2.astype(jnp.float32))
    return jnp.concatenate(
        [w1.T.astype(jnp.float32),
         b1.reshape(H, 1).astype(jnp.float32),
         w2.astype(jnp.float32),
         b2_col],
        axis=1,
    )


def _forward_feature_major(xT_pad, packed, n_out, tb, n_steps):
    """Core Pallas call on feature-major slabs: (n_in, B_pad) -> (n_out, B_pad)."""
    n_in, B_pad = xT_pad.shape
    H, n_cols = packed.shape
    kernel = functools.partial(_mlp_kernel, n_in=n_in, n_out=n_out)
    return pl.pallas_call(
        kernel,
        out_shape=jax.ShapeDtypeStruct((n_out, B_pad), jnp.float32),
        grid_spec=pltpu.PrefetchScalarGridSpec(
            num_scalar_prefetch=0,
            grid=(n_steps,),
            in_specs=[
                pl.BlockSpec((n_in, tb), lambda i: (0, i)),     # streamed x tiles
                pl.BlockSpec((H, n_cols), lambda i: (0, 0)),    # resident packed params
            ],
            out_specs=pl.BlockSpec((n_out, tb), lambda i: (0, i)),
        ),
        compiler_params=pltpu.CompilerParams(
            dimension_semantics=("parallel",),   # shards the (>=2)-step grid on v7x
        ),
        cost_estimate=pl.CostEstimate(
            flops=int(B_pad * (2 * n_in * H + H + 2 * H * n_out + n_out)),
            transcendentals=int(B_pad * H),
            bytes_accessed=int(4 * (B_pad * (n_in + n_out) + H * n_cols)),
        ),
    )(xT_pad, packed)


def regressor_forward(x, packed, n_outputs, *, tile_b=16384):
    """Forward pass, PyTorch-layout convenience wrapper.

    x: (B, n_inputs) float -> (B, n_outputs) float32.
    `packed` comes from pack_params().  For overhead-sensitive pipelines keep
    the (n_in, B)/(n_out, B) slabs end-to-end and call _forward_feature_major;
    at very small B an XLA-fused tanh(x@w1+b1)@w2+b2 is also a valid bypass.
    """
    B, n_in = x.shape
    n_out = n_outputs

    # Tiling: single grid step whenever the 128-rounded batch fits one tile;
    # otherwise cdiv into equal tiles (<=128 padded lanes total, never a
    # tb-sized tail).  tile_b=16384 keeps per-step compute >> per-step pipeline
    # overhead while staying a few MiB of VMEM on every generation.
    tile_b = _round_up(max(int(tile_b), 128), 128)
    B128 = _round_up(B, 128)
    n_steps = pl.cdiv(B128, tile_b)
    tb = _round_up(pl.cdiv(B128, n_steps), 128)
    B_pad = n_steps * tb

    # One-time layout plumbing: batch -> lanes, zero-pad the tail (padded
    # columns produce finite garbage that is sliced away below).
    xT = jnp.pad(x.astype(jnp.float32).T, ((0, 0), (0, B_pad - B)))
    out = _forward_feature_major(xT, packed, n_out, tb, n_steps)
    return out[:, :B].T


def init_params(key, n_inputs=2, n_outputs=1, hidden_size=16):
    # Deterministic init mimicking PyTorch nn.Linear default:
    # U(-1/sqrt(fan_in), 1/sqrt(fan_in)); stored as (in_features, out_features).
    k1, k2, k3, k4 = jax.random.split(key, 4)
    bound1 = 1.0 / jnp.sqrt(n_inputs)
    bound2 = 1.0 / jnp.sqrt(hidden_size)
    w1 = jax.random.uniform(k1, (n_inputs, hidden_size), jnp.float32, -bound1, bound1)
    b1 = jax.random.uniform(k2, (hidden_size,), jnp.float32, -bound1, bound1)
    w2 = jax.random.uniform(k3, (hidden_size, n_outputs), jnp.float32, -bound2, bound2)
    b2 = jax.random.uniform(k4, (n_outputs,), jnp.float32, -bound2, bound2)
    return w1, b1, w2, b2


if __name__ == "__main__":
    key = jax.random.PRNGKey(0)
    kx, kp = jax.random.split(key)

    batch, n_inputs, hidden_size, n_outputs = 8, 2, 16, 1
    x = jax.random.normal(kx, (batch, n_inputs), jnp.float32)
    w1, b1, w2, b2 = init_params(kp, n_inputs, n_outputs, hidden_size)
    packed = pack_params(w1, b1, w2, b2)

    # Small batch: single grid step (tb = 128).
    y = regressor_forward(x, packed, n_outputs)
    jax.block_until_ready(y)
    y_ref = jnp.tanh(x @ w1 + b1) @ w2 + b2
    assert y.shape == (batch, n_outputs)
    assert jnp.allclose(y, y_ref, atol=1e-5, rtol=1e-5), "mismatch vs reference"

    # Medium batch: still a single grid step (round_up(1200,128)=1280 <= 16384),
    # so no tile-sized tail-padding waste.
    xb = jax.random.normal(kx, (1200, n_inputs), jnp.float32)
    yb = regressor_forward(xb, packed, n_outputs)
    jax.block_until_ready(yb)
    yb_ref = jnp.tanh(xb @ w1 + b1) @ w2 + b2
    assert jnp.allclose(yb, yb_ref, atol=1e-5, rtol=1e-5), "mismatch (medium batch)"

    # Force the multi-step pipelined path (grid of 5 equal 256-lane tiles,
    # exercises the "parallel" axis / double-buffered x DMAs).
    yc = regressor_forward(xb, packed, n_outputs, tile_b=256)
    jax.block_until_ready(yc)
    assert jnp.allclose(yc, yb_ref, atol=1e-5, rtol=1e-5), "mismatch (multi-step grid)"

    # Multi-output head: exercises the direct per-row lane-dense stores.
    w1m, b1m, w2m, b2m = init_params(kp, n_inputs, 3, hidden_size)
    packed_m = pack_params(w1m, b1m, w2m, b2m)
    ym = regressor_forward(x, packed_m, 3)
    jax.block_until_ready(ym)
    ym_ref = jnp.tanh(x @ w1m + b1m) @ w2m + b2m
    assert jnp.allclose(ym, ym_ref, atol=1e-5, rtol=1e-5), "mismatch (n_outputs=3)"

    print("KERNEL_OK")
</pallas_src>

<mosaic_0001>
module attributes {stable_mosaic.version = 11 : i64} {
  func.func @_mlp_kernel(%arg0: i32, %arg1: memref<2x128xf32, #tpu.memory_space<vmem>>, %arg2: memref<16x5xf32, #tpu.memory_space<vmem>>, %arg3: memref<1x128xf32, #tpu.memory_space<vmem>>) attributes {dimension_semantics = [#tpu.dimension_semantics<parallel>], iteration_bounds = array<i64: 1>, scalar_prefetch = 0 : i64, scratch_operands = 0 : i64, tpu.core_type = #tpu.core_type<tc>, window_params = [{transform_indices = @transform_0, window_bounds = array<i64: 2, 128>}, {pipeline_mode = #tpu.pipeline_mode<synchronous>, transform_indices = @transform_1, window_bounds = array<i64: 16, 5>}, {transform_indices = @transform_2, window_bounds = array<i64: 1, 128>}]} {
    %c0 = arith.constant 0 : index
    %c0_0 = arith.constant 0 : index
    %0 = vector.load %arg1[%c0, %c0_0] : memref<2x128xf32, #tpu.memory_space<vmem>>, vector<2x128xf32>
    %c0_1 = arith.constant 0 : index
    %c0_2 = arith.constant 0 : index
    %1 = vector.load %arg2[%c0_1, %c0_2] : memref<16x5xf32, #tpu.memory_space<vmem>>, vector<16x2xf32>
    %c0_3 = arith.constant 0 : index
    %c2 = arith.constant 2 : index
    %2 = vector.load %arg2[%c0_3, %c2] : memref<16x5xf32, #tpu.memory_space<vmem>>, vector<16x1xf32>
    %3 = vector.extract_strided_slice %1 {offsets = [0, 0], sizes = [16, 1], strides = [1, 1]} : vector<16x2xf32> to vector<16x1xf32>
    %4 = vector.extract_strided_slice %0 {offsets = [0, 0], sizes = [1, 128], strides = [1, 1]} : vector<2x128xf32> to vector<1x128xf32>
    %5 = vector.broadcast %3 : vector<16x1xf32> to vector<16x128xf32>
    %6 = vector.broadcast %4 : vector<1x128xf32> to vector<16x128xf32>
    %7 = arith.mulf %5, %6 : vector<16x128xf32>
    %8 = vector.extract_strided_slice %1 {offsets = [0, 1], sizes = [16, 1], strides = [1, 1]} : vector<16x2xf32> to vector<16x1xf32>
    %9 = vector.extract_strided_slice %0 {offsets = [1, 0], sizes = [1, 128], strides = [1, 1]} : vector<2x128xf32> to vector<1x128xf32>
    %10 = vector.broadcast %8 : vector<16x1xf32> to vector<16x128xf32>
    %11 = vector.broadcast %9 : vector<1x128xf32> to vector<16x128xf32>
    %12 = arith.mulf %10, %11 : vector<16x128xf32>
    %13 = arith.addf %7, %12 : vector<16x128xf32>
    %14 = vector.broadcast %2 : vector<16x1xf32> to vector<16x128xf32>
    %15 = arith.addf %13, %14 : vector<16x128xf32>
    %16 = math.tanh %15 : vector<16x128xf32>
    %c0_4 = arith.constant 0 : index
    %c3 = arith.constant 3 : index
    %17 = vector.load %arg2[%c0_4, %c3] : memref<16x5xf32, #tpu.memory_space<vmem>>, vector<16x1xf32>
    %c0_5 = arith.constant 0 : index
    %c4 = arith.constant 4 : index
    %18 = vector.load %arg2[%c0_5, %c4] : memref<16x5xf32, #tpu.memory_space<vmem>>, vector<1x1xf32>
    %19 = vector.broadcast %17 : vector<16x1xf32> to vector<16x128xf32>
    %20 = arith.mulf %19, %16 : vector<16x128xf32>
    %cst = arith.constant dense<0.000000e+00> : vector<128xf32>
    %21 = vector.multi_reduction <add>, %20, %cst [0] : vector<16x128xf32> to vector<128xf32>
    %22 = vector.shape_cast %21 : vector<128xf32> to vector<1x128xf32>
    %23 = vector.broadcast %18 : vector<1x1xf32> to vector<1x128xf32>
    %24 = arith.addf %22, %23 : vector<1x128xf32>
    %c0_6 = arith.constant 0 : index
    %c0_7 = arith.constant 0 : index
    %25 = vector.load %arg3[%c0_6, %c0_7] : memref<1x128xf32, #tpu.memory_space<vmem>>, vector<1x128xf32>
    tpu.vector_store %arg3[%c0_6, %c0_7], %24 {strides = array<i32>} : memref<1x128xf32, #tpu.memory_space<vmem>>, vector<1x128xf32>,
    return
  }
  func.func @transform_0(%arg0: i32) -> (i32, i32) {
    %c0_i32 = arith.constant 0 : i32
    %c0_i32_0 = arith.constant 0 : i32
    return %c0_i32, %arg0 : i32, i32
  }
  func.func @transform_1(%arg0: i32) -> (i32, i32) {
    %c0_i32 = arith.constant 0 : i32
    %c0_i32_0 = arith.constant 0 : i32
    %c0_i32_1 = arith.constant 0 : i32
    return %c0_i32, %c0_i32_0 : i32, i32
  }
  func.func @transform_2(%arg0: i32) -> (i32, i32) {
    %c0_i32 = arith.constant 0 : i32
    %c0_i32_0 = arith.constant 0 : i32
    return %c0_i32, %arg0 : i32, i32
  }
}

</mosaic_0001>

<bundles_post_ra>
// kernel: tpu_custom_call.1
= control target key start
LH: loop header
LB: loop body
LE: loop exit
PB: predicated region body
PF: predicated region fallthrough
CT: control target
= control target key end

     0   :  { %v137_v1 = vmov 1   ;;  %v138_v2 = vmov 0   ;;  %s173_s0 = inlined_call_operand.vmem [shape: f32[2,128], index: 0, kind: input, shape index: {}]   ;;  %s174_s1 = inlined_call_operand.vmem [shape: f32[16,5], index: 1, kind: input, shape index: {}]   ;;  %s175_s2 = inlined_call_operand.hbm [shape: f32[1,128], index: 2, kind: output, shape index: {}]  }
   0x1   :  { %v13_v0 = vld [vmem:[%s174_s1] sm:$0xff]  ;;  %101 = vset.pattern.permute.xlu1 %v137_v1  ;;  %100 = vset.pattern.permute.xlu0 %v138_v2 }
   0x2   :  { %7 = vsyncpa [#allocation3], 0  ;;  %29 = vperm.xlu1 %101, %v13_v0   ;;  %17 = vperm.xlu0 %100, %v13_v0   ;;  %v139_v3 = vmov 2   ;;  %v14_v4 = vld [vmem:[%s174_s1 + $0x8] sm:$0xff]  ;;  %v140_v5 = vmov 3   ;;  %v141_v7 = vmov 4  }
   0x3   :  { %102 = vset.pattern.permute.xlu2 %v139_v3  ;;  %v53_v6 = vld [vmem:[%s174_s1] sm:$0x1]  ;;  %s85_s19 = sshll.u32 %s175_s2, 4  ;;  %s86_s19 = int_to_ptr.hbm [resolvable:$true] %s85_s19 }
   0x4   :  { %42 = vperm.xlu2 %102, %v13_v0   ;;  %v12_v8 = vld [vmem:[%s173_s0] sm:$0x3]  ;;  %s142_s0 = smov [#allocation2]  }
   0x5   :  { %v36_v9 = vperm.slane %v12_v8, 1  ;;  %v25_v10 = vperm.slane %v12_v8, 0  ;;  %s83_s1 = sshll.u32 %s142_s0, 4  ;;  %s84_s1 = int_to_ptr.vmem [resolvable:$true] %s83_s1 }
   0xa   :  { %33 = vperm.xlu1 %101, %v14_v4   ;;  %22 = vperm.xlu0 %100, %v14_v4  }
   0xc   :  { %46 = vperm.xlu2 %102, %v14_v4  }
  0x12   :  { %103 = vset.pattern.permute.xlu0 %v140_v5  ;;  %104 = vset.pattern.permute.xlu1 %v140_v5 }
  0x13   :  { %55 = vperm.xlu0 %103, %v13_v0   ;;  %59 = vperm.xlu1 %104, %v14_v4  }
  0x14   :  { %105 = vset.pattern.permute.xlu2 %v141_v7 }
  0x15   :  { %73 = vperm.xlu2 %105, %v53_v6  }
  0x1b   :  { %106 = vset.pattern.permute.xlu0 %v141_v7 }
  0x5e   :  { %v43_v13 = vpop.permute.xlu2 %42 }
  0x66   :  { %v47_v23 = vpop.permute.xlu2 %46 }
  0x6f   :  { %v74_v37 = vpop.permute.xlu2 %73 }
  0x74   :  { %v30_v11 = vpop.permute.xlu1 %29  ;;  %v18_v12 = vpop.permute.xlu0 %17 }
  0x75   :  { %v37_v14 = vmul.f32 %v36_v9, %v30_v11  ;;  %v26_v15 = vmul.f32 %v25_v10, %v18_v12 }
  0x77   :  { %v39_v16 = vadd.f32 %v37_v14, %v26_v15 }
  0x79   :  { %v49_v21 = vadd.f32 %v43_v13, %v39_v16 }
  0x7b   :  { %107 = vtanh.f32 %v49_v21 }
  0x7c   :  { %v34_v17 = vpop.permute.xlu1 %33  ;;  %v23_v18 = vpop.permute.xlu0 %22 }
  0x7d   :  { %v38_v19 = vmul.f32 %v36_v9, %v34_v17  ;;  %v27_v20 = vmul.f32 %v25_v10, %v23_v18 }
  0x7f   :  { %v40_v22 = vadd.f32 %v38_v19, %v27_v20 }
  0x81   :  { %v50_v24 = vadd.f32 %v47_v23, %v40_v22  ;;  %v108_v27 = vpop.eup %107 }
  0x83   :  { %109 = vtanh.f32 %v50_v24 }
  0x85   :  { %v56_v25 = vpop.permute.xlu0 %55  ;;  %v60_v26 = vpop.permute.xlu1 %59 }
  0x86   :  { %v62_v29 = vmul.f32 %v108_v27, %v56_v25 }
  0x89   :  { %v110_v28 = vpop.eup %109 }
  0x8a   :  { %v63_v30 = vmul.f32 %v110_v28, %v60_v26 }
  0x8c   :  { %v64_v31 = vadd.f32 %v63_v30, %v62_v29 }
  0x8e   :  { %v65_v32 = vrot.slane %v64_v31, 4 }
  0x90   :  { %v66_v33 = vadd.f32 %v65_v32, %v64_v31 }
  0x92   :  { %v67_v34 = vrot.slane %v66_v33, 2 }
  0x94   :  { %v68_v35 = vadd.f32 %v67_v34, %v66_v33 }
  0x96   :  { %v69_v36 = vrot.slane %v68_v35, 1 }
  0x98   :  { %v70_v38 = vadd.f32 %v69_v36, %v68_v35 }
  0x9a   :  { %v76_v39 = vadd.f32 %v74_v37, %v70_v38 }
  0x9c   :  { %77 = vst [vmem:[#allocation2] sm:$0x1] %v76_v39 }
  0x9d   :  { %88 = dma.vmem_to_hbm [thread:$0]  %s84_s1, 16, %s86_s19, [#allocation3]  }
  0x9e   :  { %135 = dma.done.wait [#allocation3], 16  }
  0x9f   :  { %136 = vsyncadd [#allocation3], 4294967280 }
  0xa0   :  { %93 = vsyncpa [#allocation3], 1 }

</bundles_post_ra>
